<compile_context>
chip_gen: v6e
topology: v6e:2x2x1
jax: 0.10.0
libtpu: 0.0.40
codegen_flags: <defaults>
</compile_context>

<pallas_src>
import functools
import jax
import jax.numpy as jnp
from jax.experimental import pallas as pl
from jax.experimental.pallas import tpu as pltpu


def _make_temporal_block_kernel(*, Bt, L, K, pad, dil, KCin, Cp, Cres,
                                has_downsample):
    """Builds the kernel. Ref shapes (per grid step):

      xcol_ref : (Bt, L, K*Cin)   bf16  conv1 im2col input
      xres_ref : (Bt, L, Cres)          residual input (bf16 if downsample,
                                        f32 channel-padded if identity)
      w1_ref   : (K*Cin, Cp)      bf16
      b1_ref   : (1, Cp)          f32
      w2_ref   : (K*Cp, Cp)       bf16
      b2_ref   : (1, Cp)          f32
      wd_ref   : (Cin, Cp)        bf16  (only if downsample)
      bd_ref   : (1, Cp)          f32   (only if downsample)
      o_ref    : (Bt, L, Cp)      f32
      h1pad_ref: (Bt, L+2*pad, Cp) f32  VMEM scratch (re-padded conv1 output)
    """

    def kernel(*refs):
        if has_downsample:
            (xcol_ref, xres_ref, w1_ref, b1_ref, w2_ref, b2_ref,
             wd_ref, bd_ref, o_ref, h1pad_ref) = refs
        else:
            (xcol_ref, xres_ref, w1_ref, b1_ref, w2_ref, b2_ref,
             o_ref, h1pad_ref) = refs

        # ---- conv1: single im2col matmul (contraction K*Cin) + ReLU --------
        xcol = xcol_ref[...].reshape(Bt * L, KCin)                     # bf16
        acc1 = jnp.dot(xcol, w1_ref[...],
                       preferred_element_type=jnp.float32)             # (Bt*L, Cp)
        h1 = jnp.maximum(acc1 + b1_ref[...], 0.0)                       # relu1; dropout1 = id

        # ---- stage h1 (re-padded along L) in VMEM scratch for conv2 --------
        if pad > 0:
            zrow = jnp.zeros((Bt, pad, Cp), jnp.float32)
            h1pad_ref[:, :pad, :] = zrow
            h1pad_ref[:, pad + L:, :] = zrow
        h1pad_ref[:, pad:pad + L, :] = h1.reshape(Bt, L, Cp)

        # ---- conv2: in-kernel im2col (K shifted ref windows -> one matmul) -
        taps = [h1pad_ref[:, k * dil:k * dil + L, :] for k in range(K)]
        h1col = jnp.concatenate(taps, axis=-1).reshape(Bt * L, K * Cp)
        acc2 = jnp.dot(h1col.astype(jnp.bfloat16), w2_ref[...],
                       preferred_element_type=jnp.float32)
        h2 = jnp.maximum(acc2 + b2_ref[...], 0.0)                       # relu2; dropout2 = id

        # ---- residual branch + final ReLU ----------------------------------
        if has_downsample:
            xres = xres_ref[...].reshape(Bt * L, Cres)                  # bf16
            res = jnp.dot(xres, wd_ref[...],
                          preferred_element_type=jnp.float32) + bd_ref[...]
        else:
            res = xres_ref[...].reshape(Bt * L, Cres)                   # f32 exact identity
        out = jnp.maximum(h2 + res, 0.0)
        o_ref[...] = out.reshape(Bt, L, Cp).astype(o_ref.dtype)

    return kernel


def temporal_block_forward(x_ncl, params, *, filter_size, stride_size,
                           padding_size, dilation_size, block_batch=None):
    """x_ncl: (N, Cin, L) float32, PyTorch layout. Returns (N, Cout, L) f32."""
    assert stride_size == 1, "kernel implemented for stride 1"
    N, Cin, L = x_ncl.shape
    K, pad, dil = filter_size, padding_size, dilation_size
    Cout = params["w1_v"].shape[0]
    # residual add in the original module requires L_out == L
    assert 2 * pad == dil * (K - 1), "padding must satisfy 2*pad == dil*(K-1)"
    has_downsample = (Cin != Cout)

    # -------- plain-JAX parameter prep (weight-norm + im2col layout) --------
    def apply_weight_norm(v, g):
        # v: (Cout, C, K); norm over (C, K) per output channel (torch dim=0)
        nrm = jnp.sqrt(jnp.sum(v * v, axis=(1, 2), keepdims=True))
        return g[:, None, None] * v / nrm

    LANE = 128
    Cp = ((Cout + LANE - 1) // LANE) * LANE                      # lane-dense Cout

    w1 = apply_weight_norm(params["w1_v"], params["w1_g"])       # (Cout, Cin, K)
    w2 = apply_weight_norm(params["w2_v"], params["w2_g"])       # (Cout, Cout, K)

    # conv1 im2col weight: row (k*Cin + c) -> tap k, in-channel c
    w1_col = jnp.transpose(w1, (2, 1, 0)).reshape(K * Cin, Cout)
    w1_col = jnp.pad(w1_col, ((0, 0), (0, Cp - Cout))).astype(jnp.bfloat16)
    # conv2 im2col weight: row (k*Cp + c) -> tap k, in-channel c (padded rows 0)
    w2_t = jnp.transpose(w2, (2, 1, 0))                          # (K, Cout, Cout)
    w2_t = jnp.pad(w2_t, ((0, 0), (0, Cp - Cout), (0, Cp - Cout)))
    w2_col = w2_t.reshape(K * Cp, Cp).astype(jnp.bfloat16)

    b1 = jnp.pad(params["b1"], (0, Cp - Cout)).reshape(1, Cp).astype(jnp.float32)
    b2 = jnp.pad(params["b2"], (0, Cp - Cout)).reshape(1, Cp).astype(jnp.float32)

    # -------- activations: channels-last + one-time im2col shifts -----------
    x_nlc = jnp.transpose(x_ncl, (0, 2, 1)).astype(jnp.float32)          # (N, L, Cin)
    x_p = jnp.pad(x_nlc, ((0, 0), (pad, pad), (0, 0)))                   # (N, L+2p, Cin)
    x_col = jnp.concatenate([x_p[:, k * dil:k * dil + L, :] for k in range(K)],
                            axis=-1).astype(jnp.bfloat16)                # (N, L, K*Cin)

    if has_downsample:
        wd = jnp.transpose(params["wd"][:, :, 0], (1, 0))                # (Cin, Cout)
        wd = jnp.pad(wd, ((0, 0), (0, Cp - Cout))).astype(jnp.bfloat16)
        bd = jnp.pad(params["bd"], (0, Cp - Cout)).reshape(1, Cp).astype(jnp.float32)
        x_res = x_nlc.astype(jnp.bfloat16)                               # (N, L, Cin)
        Cres = Cin
    else:
        # identity residual: keep f32, pad channels so the add is exact
        x_res = jnp.pad(x_nlc, ((0, 0), (0, 0), (0, Cp - Cin)))          # (N, L, Cp)
        Cres = Cp

    # -------- batch tiling: Bt batch elements per grid step -----------------
    Bt = block_batch or min(N, 8)
    Np = ((N + Bt - 1) // Bt) * Bt
    if Np != N:
        x_col = jnp.pad(x_col, ((0, Np - N), (0, 0), (0, 0)))
        x_res = jnp.pad(x_res, ((0, Np - N), (0, 0), (0, 0)))

    Lp = L + 2 * pad
    KCin = K * Cin

    kernel = _make_temporal_block_kernel(
        Bt=Bt, L=L, K=K, pad=pad, dil=dil, KCin=KCin, Cp=Cp, Cres=Cres,
        has_downsample=has_downsample)

    batch_map = lambda n: (n, 0, 0)
    const2 = lambda n: (0, 0)

    in_specs = [
        pl.BlockSpec((Bt, L, KCin), batch_map),     # x_col
        pl.BlockSpec((Bt, L, Cres), batch_map),     # x_res
        pl.BlockSpec((KCin, Cp), const2),           # w1_col
        pl.BlockSpec((1, Cp), const2),              # b1
        pl.BlockSpec((K * Cp, Cp), const2),         # w2_col
        pl.BlockSpec((1, Cp), const2),              # b2
    ]
    args = [x_col, x_res, w1_col, b1, w2_col, b2]
    if has_downsample:
        in_specs += [pl.BlockSpec((Cin, Cp), const2),    # wd
                     pl.BlockSpec((1, Cp), const2)]      # bd
        args += [wd, bd]

    out_nlc = pl.pallas_call(
        kernel,
        out_shape=jax.ShapeDtypeStruct((Np, L, Cp), jnp.float32),
        grid_spec=pltpu.PrefetchScalarGridSpec(
            num_scalar_prefetch=0,
            grid=(Np // Bt,),
            in_specs=in_specs,
            out_specs=pl.BlockSpec((Bt, L, Cp), batch_map),
            scratch_shapes=[pltpu.VMEM((Bt, Lp, Cp), jnp.float32)],
        ),
        compiler_params=pltpu.CompilerParams(
            dimension_semantics=("parallel",)),
    )(*args)

    # back to PyTorch NCL layout; drop channel/batch padding
    return jnp.transpose(out_nlc[:N, :, :Cout], (0, 2, 1))


# ----------------------------- pure-JAX reference -------------------------------
def _conv1d_ref(x_ncl, w_oik, b, pad, dil):
    N, Cin, L = x_ncl.shape
    Cout, _, K = w_oik.shape
    xp = jnp.pad(x_ncl, ((0, 0), (0, 0), (pad, pad)))
    out = jnp.zeros((N, Cout, L), jnp.float32)
    for k in range(K):
        out = out + jnp.einsum("ncl,oc->nol", xp[:, :, k * dil:k * dil + L],
                               w_oik[:, :, k],
                               precision=jax.lax.Precision.HIGHEST)
    return out + b[None, :, None]


def temporal_block_ref(x_ncl, params, *, filter_size, padding_size, dilation_size):
    def wn(v, g):
        nrm = jnp.sqrt(jnp.sum(v * v, axis=(1, 2), keepdims=True))
        return g[:, None, None] * v / nrm
    w1 = wn(params["w1_v"], params["w1_g"])
    w2 = wn(params["w2_v"], params["w2_g"])
    h = jax.nn.relu(_conv1d_ref(x_ncl, w1, params["b1"], padding_size, dilation_size))
    h = jax.nn.relu(_conv1d_ref(h, w2, params["b2"], padding_size, dilation_size))
    Cin, Cout = x_ncl.shape[1], w1.shape[0]
    if Cin != Cout:
        res = _conv1d_ref(x_ncl, params["wd"], params["bd"], 0, 1)
    else:
        res = x_ncl
    return jax.nn.relu(h + res)


if __name__ == "__main__":
    # Small shapes consistent with the module: stride=1, 2*pad == dil*(K-1)
    # so conv output length == L and the residual add is valid.
    K, stride, pad, dil = 3, 1, 1, 1
    key = jax.random.PRNGKey(0)

    def make_params(cin, cout, key):
        ks = jax.random.split(key, 8)
        p = {
            "w1_v": 0.01 * jax.random.normal(ks[0], (cout, cin, K), jnp.float32),
            "w1_g": 0.3 + 0.3 * jax.random.uniform(ks[1], (cout,), jnp.float32),
            "b1": 0.01 * jax.random.normal(ks[2], (cout,), jnp.float32),
            "w2_v": 0.01 * jax.random.normal(ks[3], (cout, cout, K), jnp.float32),
            "w2_g": 0.3 + 0.3 * jax.random.uniform(ks[4], (cout,), jnp.float32),
            "b2": 0.01 * jax.random.normal(ks[5], (cout,), jnp.float32),
        }
        if cin != cout:
            p["wd"] = 0.01 * jax.random.normal(ks[6], (cout, cin, 1), jnp.float32)
            p["bd"] = 0.01 * jax.random.normal(ks[7], (cout,), jnp.float32)
        return p

    ok = True

    # Case 1: Cin != Cout (downsample path).
    N, Cin, Cout, L = 2, 4, 8, 16
    k1, k2, k3, k4 = jax.random.split(key, 4)
    params = make_params(Cin, Cout, k1)
    x = jax.random.normal(k2, (N, Cin, L), jnp.float32)
    out = temporal_block_forward(x, params, filter_size=K, stride_size=stride,
                                 padding_size=pad, dilation_size=dil)
    out = jax.block_until_ready(out)
    ref = temporal_block_ref(x, params, filter_size=K, padding_size=pad,
                             dilation_size=dil)
    assert out.shape == (N, Cout, L)
    err = float(jnp.max(jnp.abs(out - ref)))
    ok &= err < 3e-2   # bf16 matmul operands, f32 accumulation

    # Case 2: Cin == Cout (identity residual path, no downsample weights).
    C = 8
    params2 = make_params(C, C, k3)
    x2 = jax.random.normal(k4, (N, C, L), jnp.float32)
    out2 = temporal_block_forward(x2, params2, filter_size=K, stride_size=stride,
                                  padding_size=pad, dilation_size=dil)
    out2 = jax.block_until_ready(out2)
    ref2 = temporal_block_ref(x2, params2, filter_size=K, padding_size=pad,
                              dilation_size=dil)
    err2 = float(jnp.max(jnp.abs(out2 - ref2)))
    ok &= out2.shape == (N, C, L) and err2 < 3e-2

    assert ok, f"mismatch vs reference (max abs err {err}, {err2})"
    print("KERNEL_OK")
</pallas_src>

<mosaic_0001>
module attributes {stable_mosaic.version = 11 : i64} {
  func.func @kernel(%arg0: i32, %arg1: memref<2x16x12xbf16, #tpu.memory_space<vmem>>, %arg2: memref<2x16x4xbf16, #tpu.memory_space<vmem>>, %arg3: memref<12x128xbf16, #tpu.memory_space<vmem>>, %arg4: memref<1x128xf32, #tpu.memory_space<vmem>>, %arg5: memref<384x128xbf16, #tpu.memory_space<vmem>>, %arg6: memref<1x128xf32, #tpu.memory_space<vmem>>, %arg7: memref<4x128xbf16, #tpu.memory_space<vmem>>, %arg8: memref<1x128xf32, #tpu.memory_space<vmem>>, %arg9: memref<2x16x128xf32, #tpu.memory_space<vmem>>, %arg10: memref<2x18x128xf32, #tpu.memory_space<vmem>>) attributes {dimension_semantics = [#tpu.dimension_semantics<parallel>], iteration_bounds = array<i64: 1>, scalar_prefetch = 0 : i64, scratch_operands = 1 : i64, tpu.core_type = #tpu.core_type<tc>, window_params = [{transform_indices = @transform_0, window_bounds = array<i64: 2, 16, 12>}, {transform_indices = @transform_1, window_bounds = array<i64: 2, 16, 4>}, {pipeline_mode = #tpu.pipeline_mode<synchronous>, transform_indices = @transform_2, window_bounds = array<i64: 12, 128>}, {pipeline_mode = #tpu.pipeline_mode<synchronous>, transform_indices = @transform_3, window_bounds = array<i64: 1, 128>}, {pipeline_mode = #tpu.pipeline_mode<synchronous>, transform_indices = @transform_4, window_bounds = array<i64: 384, 128>}, {pipeline_mode = #tpu.pipeline_mode<synchronous>, transform_indices = @transform_5, window_bounds = array<i64: 1, 128>}, {pipeline_mode = #tpu.pipeline_mode<synchronous>, transform_indices = @transform_6, window_bounds = array<i64: 4, 128>}, {pipeline_mode = #tpu.pipeline_mode<synchronous>, transform_indices = @transform_7, window_bounds = array<i64: 1, 128>}, {transform_indices = @transform_8, window_bounds = array<i64: 2, 16, 128>}]} {
    %c0 = arith.constant 0 : index
    %c0_0 = arith.constant 0 : index
    %c0_1 = arith.constant 0 : index
    %0 = vector.load %arg1[%c0, %c0_0, %c0_1] : memref<2x16x12xbf16, #tpu.memory_space<vmem>>, vector<2x16x12xbf16>
    %1 = vector.shape_cast %0 : vector<2x16x12xbf16> to vector<32x12xbf16>
    %c0_2 = arith.constant 0 : index
    %c0_3 = arith.constant 0 : index
    %2 = vector.load %arg3[%c0_2, %c0_3] : memref<12x128xbf16, #tpu.memory_space<vmem>>, vector<12x128xbf16>
    %cst = arith.constant dense<0.000000e+00> : vector<32x128xf32>
    %3 = tpu.matmul %1, %2, %cst {dimension_numbers = #tpu.dot_dimension_numbers<[1], [0], [0], [1], [0, 0, 1, 1], [], []>} : vector<32x12xbf16>, vector<12x128xbf16>, vector<32x128xf32> -> vector<32x128xf32>
    %c0_4 = arith.constant 0 : index
    %c0_5 = arith.constant 0 : index
    %4 = vector.load %arg4[%c0_4, %c0_5] : memref<1x128xf32, #tpu.memory_space<vmem>>, vector<1x128xf32>
    %5 = vector.broadcast %4 : vector<1x128xf32> to vector<32x128xf32>
    %6 = arith.addf %3, %5 : vector<32x128xf32>
    %cst_6 = arith.constant 0.000000e+00 : f32
    %7 = vector.broadcast %cst_6 : f32 to vector<32x128xf32>
    %8 = arith.maximumf %6, %7 : vector<32x128xf32>
    %cst_7 = arith.constant 0.000000e+00 : f32
    %9 = vector.broadcast %cst_7 : f32 to vector<2x1x128xf32>
    %c0_8 = arith.constant 0 : index
    %c0_9 = arith.constant 0 : index
    %c0_10 = arith.constant 0 : index
    %10 = vector.load %arg10[%c0_8, %c0_9, %c0_10] : memref<2x18x128xf32, #tpu.memory_space<vmem>>, vector<2x1x128xf32>
    tpu.vector_store %arg10[%c0_8, %c0_9, %c0_10], %9 {strides = array<i32>} : memref<2x18x128xf32, #tpu.memory_space<vmem>>, vector<2x1x128xf32>,
    %c0_11 = arith.constant 0 : index
    %c17 = arith.constant 17 : index
    %c0_12 = arith.constant 0 : index
    %11 = vector.load %arg10[%c0_11, %c17, %c0_12] : memref<2x18x128xf32, #tpu.memory_space<vmem>>, vector<2x1x128xf32>
    tpu.vector_store %arg10[%c0_11, %c17, %c0_12], %9 {strides = array<i32>} : memref<2x18x128xf32, #tpu.memory_space<vmem>>, vector<2x1x128xf32>,
    %12 = vector.shape_cast %8 : vector<32x128xf32> to vector<2x16x128xf32>
    %c0_13 = arith.constant 0 : index
    %c1 = arith.constant 1 : index
    %c0_14 = arith.constant 0 : index
    %13 = vector.load %arg10[%c0_13, %c1, %c0_14] : memref<2x18x128xf32, #tpu.memory_space<vmem>>, vector<2x16x128xf32>
    tpu.vector_store %arg10[%c0_13, %c1, %c0_14], %12 {strides = array<i32>} : memref<2x18x128xf32, #tpu.memory_space<vmem>>, vector<2x16x128xf32>,
    %c0_15 = arith.constant 0 : index
    %c0_16 = arith.constant 0 : index
    %c0_17 = arith.constant 0 : index
    %14 = vector.load %arg10[%c0_15, %c0_16, %c0_17] : memref<2x18x128xf32, #tpu.memory_space<vmem>>, vector<2x16x128xf32>
    %c0_18 = arith.constant 0 : index
    %c1_19 = arith.constant 1 : index
    %c0_20 = arith.constant 0 : index
    %15 = vector.load %arg10[%c0_18, %c1_19, %c0_20] : memref<2x18x128xf32, #tpu.memory_space<vmem>>, vector<2x16x128xf32>
    %c0_21 = arith.constant 0 : index
    %c2 = arith.constant 2 : index
    %c0_22 = arith.constant 0 : index
    %16 = vector.load %arg10[%c0_21, %c2, %c0_22] : memref<2x18x128xf32, #tpu.memory_space<vmem>>, vector<2x16x128xf32>
    %17 = tpu.concatenate %14, %15, %16 in 2 : vector<2x16x128xf32>, vector<2x16x128xf32>, vector<2x16x128xf32> -> vector<2x16x384xf32>
    %18 = vector.shape_cast %17 : vector<2x16x384xf32> to vector<32x384xf32>
    %19 = arith.truncf %18 : vector<32x384xf32> to vector<32x384xbf16>
    %c0_23 = arith.constant 0 : index
    %c0_24 = arith.constant 0 : index
    %20 = vector.load %arg5[%c0_23, %c0_24] : memref<384x128xbf16, #tpu.memory_space<vmem>>, vector<384x128xbf16>
    %cst_25 = arith.constant dense<0.000000e+00> : vector<32x128xf32>
    %21 = tpu.matmul %19, %20, %cst_25 {dimension_numbers = #tpu.dot_dimension_numbers<[1], [0], [0], [1], [0, 0, 1, 1], [], []>} : vector<32x384xbf16>, vector<384x128xbf16>, vector<32x128xf32> -> vector<32x128xf32>
    %c0_26 = arith.constant 0 : index
    %c0_27 = arith.constant 0 : index
    %22 = vector.load %arg6[%c0_26, %c0_27] : memref<1x128xf32, #tpu.memory_space<vmem>>, vector<1x128xf32>
    %23 = vector.broadcast %22 : vector<1x128xf32> to vector<32x128xf32>
    %24 = arith.addf %21, %23 : vector<32x128xf32>
    %cst_28 = arith.constant 0.000000e+00 : f32
    %25 = vector.broadcast %cst_28 : f32 to vector<32x128xf32>
    %26 = arith.maximumf %24, %25 : vector<32x128xf32>
    %c0_29 = arith.constant 0 : index
    %c0_30 = arith.constant 0 : index
    %c0_31 = arith.constant 0 : index
    %27 = vector.load %arg2[%c0_29, %c0_30, %c0_31] : memref<2x16x4xbf16, #tpu.memory_space<vmem>>, vector<2x16x4xbf16>
    %28 = vector.shape_cast %27 : vector<2x16x4xbf16> to vector<32x4xbf16>
    %c0_32 = arith.constant 0 : index
    %c0_33 = arith.constant 0 : index
    %29 = vector.load %arg7[%c0_32, %c0_33] : memref<4x128xbf16, #tpu.memory_space<vmem>>, vector<4x128xbf16>
    %cst_34 = arith.constant dense<0.000000e+00> : vector<32x128xf32>
    %30 = tpu.matmul %28, %29, %cst_34 {dimension_numbers = #tpu.dot_dimension_numbers<[1], [0], [0], [1], [0, 0, 1, 1], [], []>} : vector<32x4xbf16>, vector<4x128xbf16>, vector<32x128xf32> -> vector<32x128xf32>
    %c0_35 = arith.constant 0 : index
    %c0_36 = arith.constant 0 : index
    %31 = vector.load %arg8[%c0_35, %c0_36] : memref<1x128xf32, #tpu.memory_space<vmem>>, vector<1x128xf32>
    %32 = vector.broadcast %31 : vector<1x128xf32> to vector<32x128xf32>
    %33 = arith.addf %30, %32 : vector<32x128xf32>
    %34 = arith.addf %26, %33 : vector<32x128xf32>
    %cst_37 = arith.constant 0.000000e+00 : f32
    %35 = vector.broadcast %cst_37 : f32 to vector<32x128xf32>
    %36 = arith.maximumf %34, %35 : vector<32x128xf32>
    %37 = vector.shape_cast %36 : vector<32x128xf32> to vector<2x16x128xf32>
    %c0_38 = arith.constant 0 : index
    %c0_39 = arith.constant 0 : index
    %c0_40 = arith.constant 0 : index
    %38 = vector.load %arg9[%c0_38, %c0_39, %c0_40] : memref<2x16x128xf32, #tpu.memory_space<vmem>>, vector<2x16x128xf32>
    tpu.vector_store %arg9[%c0_38, %c0_39, %c0_40], %37 {strides = array<i32>} : memref<2x16x128xf32, #tpu.memory_space<vmem>>, vector<2x16x128xf32>,
    return
  }
  func.func @transform_0(%arg0: i32) -> (i32, i32, i32) {
    %c0_i32 = arith.constant 0 : i32
    %c0_i32_0 = arith.constant 0 : i32
    %c0_i32_1 = arith.constant 0 : i32
    return %arg0, %c0_i32, %c0_i32_0 : i32, i32, i32
  }
  func.func @transform_1(%arg0: i32) -> (i32, i32, i32) {
    %c0_i32 = arith.constant 0 : i32
    %c0_i32_0 = arith.constant 0 : i32
    %c0_i32_1 = arith.constant 0 : i32
    return %arg0, %c0_i32, %c0_i32_0 : i32, i32, i32
  }
  func.func @transform_2(%arg0: i32) -> (i32, i32) {
    %c0_i32 = arith.constant 0 : i32
    %c0_i32_0 = arith.constant 0 : i32
    %c0_i32_1 = arith.constant 0 : i32
    return %c0_i32, %c0_i32_0 : i32, i32
  }
  func.func @transform_3(%arg0: i32) -> (i32, i32) {
    %c0_i32 = arith.constant 0 : i32
    %c0_i32_0 = arith.constant 0 : i32
    %c0_i32_1 = arith.constant 0 : i32
    return %c0_i32, %c0_i32_0 : i32, i32
  }
  func.func @transform_4(%arg0: i32) -> (i32, i32) {
    %c0_i32 = arith.constant 0 : i32
    %c0_i32_0 = arith.constant 0 : i32
    %c0_i32_1 = arith.constant 0 : i32
    return %c0_i32, %c0_i32_0 : i32, i32
  }
  func.func @transform_5(%arg0: i32) -> (i32, i32) {
    %c0_i32 = arith.constant 0 : i32
    %c0_i32_0 = arith.constant 0 : i32
    %c0_i32_1 = arith.constant 0 : i32
    return %c0_i32, %c0_i32_0 : i32, i32
  }
  func.func @transform_6(%arg0: i32) -> (i32, i32) {
    %c0_i32 = arith.constant 0 : i32
    %c0_i32_0 = arith.constant 0 : i32
    %c0_i32_1 = arith.constant 0 : i32
    return %c0_i32, %c0_i32_0 : i32, i32
  }
  func.func @transform_7(%arg0: i32) -> (i32, i32) {
    %c0_i32 = arith.constant 0 : i32
    %c0_i32_0 = arith.constant 0 : i32
    %c0_i32_1 = arith.constant 0 : i32
    return %c0_i32, %c0_i32_0 : i32, i32
  }
  func.func @transform_8(%arg0: i32) -> (i32, i32, i32) {
    %c0_i32 = arith.constant 0 : i32
    %c0_i32_0 = arith.constant 0 : i32
    %c0_i32_1 = arith.constant 0 : i32
    return %arg0, %c0_i32, %c0_i32_0 : i32, i32, i32
  }
}

</mosaic_0001>

<bundles_post_ra>
// kernel: tpu_custom_call.1
= control target key start
LH: loop header
LB: loop body
LE: loop exit
PB: predicated region body
PF: predicated region fallthrough
CT: control target
= control target key end

     0   :  { %13 = vsyncpa [#allocation4], 0  ;;  %s854_s0 = inlined_call_operand.vmem [shape: bf16[2,16,12], index: 0, kind: input, shape index: {}]   ;;  %s855_s1 = inlined_call_operand.vmem [shape: bf16[2,16,4], index: 1, kind: input, shape index: {}]   ;;  %s856_s2 = inlined_call_operand.vmem [shape: bf16[12,128], index: 2, kind: input, shape index: {}]   ;;  %s857_s3 = inlined_call_operand.vmem [shape: f32[1,128], index: 3, kind: input, shape index: {}]   ;;  %s858_s4 = inlined_call_operand.hbm [shape: bf16[384,128], index: 4, kind: input, shape index: {}]   ;;  %s859_s5 = inlined_call_operand.vmem [shape: f32[1,128], index: 5, kind: input, shape index: {}]   ;;  %s860_s6 = inlined_call_operand.vmem [shape: bf16[4,128], index: 6, kind: input, shape index: {}]   ;;  %s861_s7 = inlined_call_operand.vmem [shape: f32[1,128], index: 7, kind: input, shape index: {}]   ;;  %s862_s8 = inlined_call_operand.hbm [shape: f32[2,16,128], index: 8, kind: output, shape index: {}]  }
   0x1   :  { %14 = vsyncpa [#allocation5], 0  ;;  %s769_s27 = smov [#allocation3]  }
   0x2   :  { %s28_s28 = sshll.u32 %s769_s27, 4  ;;  %s29_s28 = int_to_ptr.vmem [resolvable:$true] %s28_s28 }
   0x3   :  { %s733_s29 = scalar_lea.vmem %s29_s28, 3072  ;;  %p738_p1 = scmp.lt.s32.totalorder %s29_s28, %s29_s28 }
   0x4   :  { %p734_p0 = scmp.ne.s32.totalorder %s29_s28, %s733_s29  ;;  %p739_p2 = scmp.lt.s32.totalorder %s733_s29, %s733_s29 }
   0x6   :  { %p740_p3 = por %p739_p2, %p738_p1 }
   0x8   :  { %p741_p4 = pnand %p740_p3, %p734_p0 }
   0xa   :  { %744 = shalt.err (!%p741_p4)
}
   0xb   :  { %s770_s30 = smov 64   ;;  %s771_s9 = smov 4  }
   0xc   :  { %34 = dma.hbm_to_vmem [thread:$0]  %s858_s4, 3072, %s29_s28, [#allocation4], %s770_s30, %s770_s30, %s771_s9  }
   0xd   :  { %765 = dma.done.wait [#allocation4], 3072  }
   0xe   :  { %766 = vsyncadd [#allocation4], 4294964224  ;;  %vm80_vm0 = vcmask 1045504   ;;  %vm73_vm1 = vcmask 97280   ;;  %v696_v0 = vld [vmem:[%s856_s2] sm:$0x3f]  }
   0xf   :  { %v697_v1 = vld [vmem:[%s854_s0] sm:$0xff]   ;;  %687 = vmatprep.subr.msk.bf16.mxu0 %vm80_vm0, %v696_v0  ;;  %v82_v2 = vsel %vm80_vm0, %v696_v0, 0  ;;  %v698_v3 = vld [vmem:[%s854_s0 + $0x8] sm:$0xff]   ;;  %v705_v10 = vld [vmem:[#allocation3 + $0x68] sm:$0xff]   ;;  %v772_v19 = vmov 0.0   ;;  %vm493_vm2 = vcmask 1041408  }
  0x10   :  { %656 = vmatpush3.bf16.msra.mxu0 %v82_v2  ;;  %657 = vmatprep.mubr.msk.bf16.mxu0 %vm73_vm1, %v697_v1  ;;  %v699_v4 = vld [vmem:[#allocation3 + $0x78] sm:$0xff]   ;;  %v702_v7 = vld [vmem:[#allocation3 + $0x70] sm:$0xff]   ;;  %v706_v11 = vld [vmem:[#allocation3 + $0xa8] sm:$0xff]   ;;  %139 = vst [vmem:[#allocation2 + $0x11] sm:$0x1] %v772_v19  ;;  %vm486_vm3 = vcmask 31744  }
  0x11   :  { %v700_v5 = vld [vmem:[#allocation3 + $0xb8] sm:$0xff]   ;;  %614 = vmatprep.subr.bf16.mxu1 %v699_v4  ;;  %v703_v8 = vld [vmem:[#allocation3 + $0xb0] sm:$0xff]   ;;  %v707_v12 = vld [vmem:[#allocation3 + $0x28] sm:$0xff]   ;;  %137 = vst [vmem:[#allocation2] sm:$0x1] %v772_v19 }
  0x12   :  { %v701_v6 = vld [vmem:[#allocation3 + $0x38] sm:$0xff]   ;;  %661 = vmatprep.subr.bf16.mxu0 %v700_v5  ;;  %v704_v9 = vld [vmem:[#allocation3 + $0x30] sm:$0xff]   ;;  %v708_v13 = vld [vmem:[#allocation3 + $0x60] sm:$0xff]   ;;  %138 = vst [vmem:[#allocation2 + $0x18] sm:$0x1] %v772_v19 }
  0x13   :  { %658 = vmatmul.mubr.msk.bf16.vlgmr.msra.gmra.mxu0 %vm73_vm1, %v698_v3  ;;  %615 = vmatpush3.bf16.msra.mxu1 %v701_v6  ;;  %v709_v14 = vld [vmem:[#allocation3 + $0xa0] sm:$0xff]   ;;  %v711_v16 = vld [vmem:[#allocation3 + $0x58] sm:$0xff]   ;;  %140 = vst [vmem:[#allocation2 + $0x29] sm:$0x1] %v772_v19  ;;  %v714_v20 = vld [vmem:[#allocation3 + $0x50] sm:$0xff]  }
  0x14   :  { %662 = vmatpush3.bf16.msra.mxu0 %v700_v5  ;;  %616 = vmatprep.subr.bf16.mxu1 %v702_v7  ;;  %v710_v15 = vld [vmem:[#allocation3 + $0x20] sm:$0xff]   ;;  %v712_v17 = vld [vmem:[#allocation3 + $0x98] sm:$0xff]   ;;  %v715_v21 = vld [vmem:[#allocation3 + $0x90] sm:$0xff]  }
  0x15   :  { %663 = vmatprep.subr.bf16.mxu0 %v703_v8  ;;  %v713_v18 = vld [vmem:[#allocation3 + $0x18] sm:$0xff]   ;;  %v716_v22 = vld [vmem:[#allocation3 + $0x10] sm:$0xff]   ;;  %v717_v23 = vld [vmem:[#allocation3 + $0x48] sm:$0xff]  }
  0x16   :  { %v718_v24 = vld [vmem:[#allocation3 + $0x88] sm:$0xff]   ;;  %v720_v26 = vld [vmem:[#allocation3 + $0x40] sm:$0xff]   ;;  %v468_v29 = vld [vmem:[%s860_s6] sm:$0x3] }
  0x17   :  { %617 = vmatpush3.bf16.msra.mxu1 %v704_v9  ;;  %v719_v25 = vld [vmem:[#allocation3 + $0x8] sm:$0xff]   ;;  %v721_v27 = vld [vmem:[#allocation3 + $0x80] sm:$0xff]   ;;  %v495_v30 = vsel %vm493_vm2, %v468_v29, 0  ;;  %v575_v31 = vld [vmem:[%s857_s3] ss:$0 sm:$0xff] }
  0x18   :  { %664 = vmatpush3.bf16.msra.mxu0 %v703_v8  ;;  %618 = vmatprep.subr.bf16.mxu1 %v705_v10  ;;  %v722_v28 = vld [vmem:[#allocation3] sm:$0xff]   ;;  %v723_v53 = vld [vmem:[%s855_s1] sm:$0xff]   ;;  %v724_v58 = vld [vmem:[%s855_s1 + $0x8] sm:$0xff]  }
  0x19   :  { %665 = vmatprep.subr.bf16.mxu0 %v706_v11  ;;  %v581_v63 = vld [vmem:[%s859_s5] ss:$0 sm:$0xff]  ;;  %s773_s5 = smov [#allocation6]  }
  0x1b   :  { %619 = vmatpush3.bf16.msra.mxu1 %v707_v12  ;;  %v606_v12 = vld [vmem:[%s861_s7] ss:$0 sm:$0xff]  ;;  %s563_s7 = sshll.u32 %s773_s5, 4  ;;  %s564_s7 = int_to_ptr.vmem [resolvable:$true] %s563_s7 }
  0x1c   :  { %666 = vmatpush3.bf16.msra.mxu0 %v706_v11  ;;  %620 = vmatprep.subr.bf16.mxu1 %v708_v13  ;;  %s745_s24 = scalar_lea.vmem %s564_s7, 512  ;;  %p750_p6 = scmp.lt.s32.totalorder %s564_s7, %s564_s7 }
  0x1d   :  { %667 = vmatprep.subr.bf16.mxu0 %v709_v14  ;;  %p746_p5 = scmp.ne.s32.totalorder %s564_s7, %s745_s24  ;;  %p751_p7 = scmp.lt.s32.totalorder %s745_s24, %s745_s24 }
  0x1f   :  { %621 = vmatpush3.bf16.msra.mxu1 %v710_v15  ;;  %p752_p8 = por %p751_p7, %p750_p6 }
  0x20   :  { %668 = vmatpush3.bf16.msra.mxu0 %v709_v14  ;;  %622 = vmatprep.subr.bf16.mxu1 %v711_v16 }
  0x21   :  { %669 = vmatprep.subr.bf16.mxu0 %v712_v17  ;;  %p753_p9 = pnand %p752_p8, %p746_p5 }
  0x23   :  { %623 = vmatpush3.bf16.msra.mxu1 %v713_v18 }
  0x24   :  { %670 = vmatpush3.bf16.msra.mxu0 %v712_v17  ;;  %624 = vmatprep.subr.bf16.mxu1 %v714_v20 }
  0x25   :  { %671 = vmatprep.subr.bf16.mxu0 %v715_v21 }
  0x27   :  { %625 = vmatpush3.bf16.msra.mxu1 %v716_v22 }
  0x28   :  { %672 = vmatpush3.bf16.msra.mxu0 %v715_v21  ;;  %626 = vmatprep.subr.bf16.mxu1 %v717_v23 }
  0x29   :  { %673 = vmatprep.subr.bf16.mxu0 %v718_v24 }
  0x2b   :  { %627 = vmatpush3.bf16.msra.mxu1 %v719_v25 }
  0x2c   :  { %674 = vmatpush3.bf16.msra.mxu0 %v718_v24  ;;  %628 = vmatprep.subr.bf16.mxu1 %v720_v26 }
  0x2d   :  { %675 = vmatprep.subr.bf16.mxu0 %v721_v27 }
  0x2f   :  { %629 = vmatpush3.bf16.msra.mxu1 %v722_v28 }
  0x30   :  { %676 = vmatpush3.bf16.msra.mxu0 %v721_v27 }
  0x31   :  { %688 = vmatprep.subr.msk.bf16.mxu0 %vm493_vm2, %v468_v29 }
  0xd3   :  { %v659_v32 = vpop.f32.mrf.mxu0 }
  0xd4   :  { %v127_v33 = vadd.f32 %v659_v32, %v575_v31 }
  0xd5   :  { %v118_v34 = vpop.f32.mrf.mxu0 }
  0xd6   :  { %v135_v35 = vmax.f32 %v127_v33, 0.0  ;;  %v119_v36 = vadd.f32 %v575_v31, %v118_v34 }
  0xd7   :  { %v660_v37 = vpop.f32.mrf.mxu0 }
  0xd8   :  { %143 = vst [vmem:[#allocation2 + $0x19] sm:$0xff] %v135_v35  ;;  %v133_v38 = vmax.f32 %v119_v36, 0.0  ;;  %v130_v39 = vadd.f32 %v660_v37, %v575_v31 }
  0xd9   :  { %v121_v40 = vpop.f32.mrf.mxu0 }
  0xda   :  { %141 = vst [vmem:[#allocation2 + $0x1] sm:$0xff] %v133_v38  ;;  %v136_v41 = vmax.f32 %v130_v39, 0.0  ;;  %v122_v42 = vadd.f32 %v575_v31, %v121_v40 }
  0xdc   :  { %144 = vst [vmem:[#allocation2 + $0x21] sm:$0xff] %v136_v41  ;;  %v134_v43 = vmax.f32 %v122_v42, 0.0  ;;  %v161_v55 = vpack.c.bf16 %v136_v41, %v135_v35 }
  0xde   :  { %142 = vst [vmem:[#allocation2 + $0x9] sm:$0xff] %v134_v43  ;;  %v158_v44 = vpack.c.bf16 %v134_v43, %v133_v38 }
  0xdf   :  { %v147_v57 = vld [vmem:[#allocation2 + $0x18] sm:$0xff] }
  0xe0   :  { %394 = vmatprep.mubr.bf16.mxu1 %v158_v44 }
  0xe1   :  { %v145_v45 = vld [vmem:[#allocation2] sm:$0xff] }
  0xe3   :  { %v155_v46 = vld [vmem:[#allocation2 + $0x1a] sm:$0xff]  ;;  %v156_v47 = vld [vmem:[#allocation2 + $0x22] sm:$0xff] }
  0xe4   :  { %v162_v54 = vpack.c.bf16 %v156_v47, %v155_v46  ;;  %v148_v56 = vld [vmem:[#allocation2 + $0x20] sm:$0xff] }
  0xe5   :  { %v153_v48 = vld [vmem:[#allocation2 + $0x2] sm:$0xff]  ;;  %v154_v49 = vld [vmem:[#allocation2 + $0xa] sm:$0xff]  ;;  %v160_v59 = vpack.c.bf16 %v148_v56, %v147_v57 }
  0xe6   :  { %v146_v50 = vld [vmem:[#allocation2 + $0x8] sm:$0xff]  ;;  %v159_v51 = vpack.c.bf16 %v154_v49, %v153_v48 }
  0xe7   :  { %v157_v52 = vpack.c.bf16 %v146_v50, %v145_v45 }
  0xe8   :  { %677 = vmatprep.mubr.bf16.mxu0 %v159_v51 }
  0xe9   :  { %395 = vmatmul.mubr.bf16.vlgmr.msra.gmra.mxu1 %v157_v52  ;;  %678 = vmatmul.mubr.bf16.vlgmr.msra.gmra.mxu0 %v162_v54 }
  0xea   :  { %402 = vmatprep.mubr.bf16.mxu1 %v161_v55  ;;  %682 = vmatpush3.bf16.msra.mxu0 %v495_v30 }
  0xeb   :  { %683 = vmatprep.mubr.msk.bf16.mxu0 %vm486_vm3, %v723_v53 }
  0xf1   :  { %403 = vmatmul.mubr.bf16.gmra.mxu1 %v160_v59  ;;  %684 = vmatmul.mubr.msk.bf16.vlgmr.msra.gmra.mxu0 %vm486_vm3, %v724_v58 }
 0x1a9   :  { %v630_v60 = vpop.f32.mrf.mxu1  ;;  %v679_v61 = vpop.f32.mrf.mxu0 }
 0x1ab   :  { %v631_v62 = vpop.f32.mrf.mxu1  ;;  %v445_v1 = vpop.f32.mrf.mxu0 }
 0x1ac   :  { %v632_v0 = vadd.f32 %v631_v62, %v630_v60 }
 0x1ad   :  { %v633_v2 = vpop.f32.mrf.mxu1  ;;  %v680_v4 = vpop.f32.mrf.mxu0 }
 0x1ae   :  { %v397_v3 = vadd.f32 %v632_v0, %v581_v63 }
 0x1af   :  { %v634_v5 = vpop.f32.mrf.mxu1  ;;  %v448_v7 = vpop.f32.mrf.mxu0 }
 0x1b0   :  { %v635_v6 = vadd.f32 %v634_v5, %v633_v2  ;;  %v446_v8 = vadd.f32 %v445_v1, %v397_v3 }
 0x1b1   :  { %v636_v9 = vpop.f32.mrf.mxu1  ;;  %v685_v11 = vpop.f32.mrf.mxu0 }
 0x1b2   :  { %v400_v10 = vadd.f32 %v635_v6, %v581_v63  ;;  %v460_v16 = vmax.f32 %v446_v8, 0.0  ;;  %v540_v30 = vadd.f32 %v685_v11, %v606_v12 }
 0x1b3   :  { %v637_v13 = vpop.f32.mrf.mxu1  ;;  %v531_v15 = vpop.f32.mrf.mxu0 }
 0x1b4   :  { %v638_v14 = vadd.f32 %v637_v13, %v636_v9  ;;  %v449_v17 = vadd.f32 %v448_v7, %v400_v10  ;;  %v532_v18 = vadd.f32 %v606_v12, %v531_v15 }
 0x1b5   :  { %v639_v19 = vpop.f32.mrf.mxu1  ;;  %v686_v21 = vpop.f32.mrf.mxu0 }
 0x1b6   :  { %v405_v20 = vadd.f32 %v638_v14, %v581_v63  ;;  %v546_v22 = vadd.f32 %v532_v18, %v460_v16  ;;  %v461_v27 = vmax.f32 %v449_v17, 0.0  ;;  %v543_v38 = vadd.f32 %v686_v21, %v606_v12 }
 0x1b7   :  { %v640_v23 = vpop.f32.mrf.mxu1  ;;  %v534_v26 = vpop.f32.mrf.mxu0 }
 0x1b8   :  { %v454_v24 = vadd.f32 %v679_v61, %v405_v20  ;;  %v641_v25 = vadd.f32 %v640_v23, %v639_v19  ;;  %v550_v28 = vmax.f32 %v546_v22, 0.0  ;;  %v535_v29 = vadd.f32 %v606_v12, %v534_v26 }
 0x1ba   :  { %v462_v31 = vmax.f32 %v454_v24, 0.0  ;;  %v408_v32 = vadd.f32 %v641_v25, %v581_v63  ;;  %554 = vst [vmem:[#allocation6] sm:$0xff] %v550_v28  ;;  %v547_v33 = vadd.f32 %v535_v29, %v461_v27 }
 0x1bc   :  { %v548_v34 = vadd.f32 %v540_v30, %v462_v31  ;;  %v457_v35 = vadd.f32 %v680_v4, %v408_v32  ;;  %v551_v36 = vmax.f32 %v547_v33, 0.0 }
 0x1be   :  { %v552_v37 = vmax.f32 %v548_v34, 0.0  ;;  %v463_v39 = vmax.f32 %v457_v35, 0.0  ;;  %555 = vst [vmem:[#allocation6 + $0x8] sm:$0xff] %v551_v36 }
 0x1c0   :  { %556 = vst [vmem:[#allocation6 + $0x10] sm:$0xff] %v552_v37  ;;  %v549_v40 = vadd.f32 %v543_v38, %v463_v39 }
 0x1c2   :  { %v553_v41 = vmax.f32 %v549_v40, 0.0 }
 0x1c4   :  { %557 = vst [vmem:[#allocation6 + $0x18] sm:$0xff] %v553_v41 }
 0x1c5   :  { %756 = shalt.err (!%p753_p9)
}
 0x1c6   :  { %s774_s25 = smov 128   ;;  %s775_s26 = smov 8  }
 0x1c7   :  { %569 = dma.vmem_to_hbm [thread:$0]  %s564_s7, 512, %s862_s8, [#allocation5], %s774_s25, %s774_s25, %s775_s26  }
 0x1c8   :  { %767 = dma.done.wait [#allocation5], 512  }
 0x1c9   :  { %768 = vsyncadd [#allocation5], 4294966784 }
 0x1ca   :  { %573 = vsyncpa [#allocation4], 1 }
 0x1cb   :  { %574 = vsyncpa [#allocation5], 1 }

</bundles_post_ra>
